<compile_context>
chip_gen: v7x
topology: tpu7x:2x2x1
jax: 0.10.0
libtpu: 0.0.40
codegen_flags: <defaults>
</compile_context>

<pallas_src>
import functools

import jax
import jax.numpy as jnp
from jax.experimental import pallas as pl
from jax.experimental.pallas import tpu as pltpu


# Deterministic MXU contraction precision for the hidden-layer matmuls.
# DEFAULT = at most a few bf16 MXU passes with f32 accumulation (never the
# 6-pass f32 emulation); pass count is now explicit and generation-stable.
MATMUL_PRECISION = jax.lax.Precision.DEFAULT


# ----------------------------------------------------------------------------
# Kernel
# ----------------------------------------------------------------------------
def _activation(h, act, beta):
    if act == "tanh":
        return jnp.tanh(h)
    # Numerically stable softplus(beta): (1/beta) * log(1 + exp(beta * h)).
    z = h if beta == 1.0 else beta * h
    sp = jnp.maximum(z, 0.0) + jnp.log1p(jnp.exp(-jnp.abs(z)))
    return sp if beta == 1.0 else sp / beta


def _mlp_kernel(*refs, n_act_layers, d_in, act, beta):
    """refs = (xin_ref, w0, b0, w1, b1, ..., w_out_col, b_out, out_ref).

    Lane-major layout: xin_ref [d_in, tile_n], out_ref [1, tile_n].
    w_i (out_i, in_i) (PyTorch layout), b_i (out_i, 1).
    The last weight is pre-transposed to a column (h_last, 1) so the output
    projection is a VPU multiply + sublane reduce (no MXU).
    All params are whole-array VMEM residents; only the batch axis is tiled.
    """
    xin_ref = refs[0]
    out_ref = refs[-1]
    params = refs[1:-1]  # (w, b) pairs; last pair is linearOut

    xin = xin_ref[...].astype(jnp.float32)         # [d_in, tile_n]

    # --- first layer: fused cat(t, x) + Linear as VPU FMA chain (K = d_in) --
    w0 = params[0][...].astype(jnp.float32)        # [h0, d_in]
    b0 = params[1][...].astype(jnp.float32)        # [h0, 1]
    h = b0                                         # broadcasts to [h0, tile_n]
    for k in range(d_in):
        h = h + w0[:, k:k + 1] * xin[k:k + 1, :]
    h = _activation(h, act, beta)

    # --- remaining hidden layers: MXU matmuls, lane-dense activations -------
    for li in range(1, n_act_layers):
        w = params[2 * li][...].astype(jnp.float32)       # [out, in]
        b = params[2 * li + 1][...].astype(jnp.float32)   # [out, 1]
        h = jnp.dot(w, h, preferred_element_type=jnp.float32,
                    precision=MATMUL_PRECISION) + b
        h = _activation(h, act, beta)

    # --- output projection (d_out = 1): VPU multiply + sublane reduce -------
    w_out_col = params[-2][...].astype(jnp.float32)       # [h_last, 1]
    b_out = params[-1][...].astype(jnp.float32)           # [1, 1]
    out = jnp.sum(w_out_col * h, axis=0, keepdims=True) + b_out
    out_ref[...] = out.astype(out_ref.dtype)


# ----------------------------------------------------------------------------
# Wrapper
# ----------------------------------------------------------------------------
def u_net_forward(t, x, weights, biases, *, act="tanh", beta=1.0, tile_n=512):
    """Pallas implementation of U_Net.forward(t, x).

    t: [N, dt], x: [N, dx]   (input_dim = dt + dx)
    weights[i]: (out_i, in_i)  -- PyTorch nn.Linear layout
    biases[i]:  (out_i, 1)
    Returns [N, 1] (float32), matching the PyTorch module.
    """
    n, dt = t.shape
    _, dx = x.shape
    d_in = dt + dx
    assert weights[0].shape[1] == d_in
    d_out = weights[-1].shape[0]
    assert d_out == 1, "U_Net.linearOut always maps to a single output"
    n_act_layers = len(weights) - 1

    # Single fused lane-major input slab [d_in, N]; the only glue HLOs around
    # the call are this concat+transpose.  No batch padding (ragged last
    # block handled by Pallas; its garbage tail columns never feed a
    # batch-axis reduction and the store is masked).
    xin_t = jnp.transpose(jnp.concatenate((t, x), axis=-1))   # [d_in, N]

    grid = (pl.cdiv(n, tile_n),)

    in_specs = [pl.BlockSpec((d_in, tile_n), lambda i: (0, i))]
    flat_params = []
    last = len(weights) - 1
    for idx, (w, b) in enumerate(zip(weights, biases)):
        if idx == last:
            w = jnp.transpose(w)   # [h_last, 1] column for the VPU projection
        # Tiny grid-invariant params: whole-array VMEM residents, no
        # per-operand double buffering / per-step DMA descriptors.
        in_specs.append(pl.BlockSpec(memory_space=pltpu.MemorySpace.VMEM))
        in_specs.append(pl.BlockSpec(memory_space=pltpu.MemorySpace.VMEM))
        flat_params.extend([w, b])

    out_spec = pl.BlockSpec((d_out, tile_n), lambda i: (0, i))

    kernel = functools.partial(
        _mlp_kernel,
        n_act_layers=n_act_layers,
        d_in=d_in,
        act=act,
        beta=beta,
    )

    out_t = pl.pallas_call(
        kernel,
        out_shape=jax.ShapeDtypeStruct((d_out, n), jnp.float32),
        grid_spec=pltpu.PrefetchScalarGridSpec(
            num_scalar_prefetch=0,
            grid=grid,
            in_specs=in_specs,
            out_specs=out_spec,
        ),
        compiler_params=pltpu.CompilerParams(
            dimension_semantics=("parallel",)),
    )(xin_t, *flat_params)

    return jnp.transpose(out_t)  # [N, 1]


# ----------------------------------------------------------------------------
# Deterministic parameter init (synthetic; shapes follow the module __init__)
# ----------------------------------------------------------------------------
def init_params(key, input_dim, hidden_list):
    dims = [input_dim] + list(hidden_list) + [1]
    weights, biases = [], []
    for i in range(len(dims) - 1):
        key, kw, kb = jax.random.split(key, 3)
        fan_in = dims[i]
        bound = 1.0 / jnp.sqrt(fan_in)
        # PyTorch nn.Linear layout: (out_features, in_features)
        w = jax.random.uniform(kw, (dims[i + 1], dims[i]), jnp.float32,
                               -bound, bound)
        b = jax.random.uniform(kb, (dims[i + 1], 1), jnp.float32,
                               -bound, bound)
        weights.append(w)
        biases.append(b)
    return weights, biases


def reference_forward(t, x, weights, biases, act="tanh", beta=1.0):
    # Full-f32 reference (precision pinned so the comparison does not depend
    # on the installed JAX's default matmul precision).
    hp = jax.lax.Precision.HIGHEST
    h = jnp.concatenate((t, x), axis=-1)
    for w, b in zip(weights[:-1], biases[:-1]):
        h = jnp.dot(h, w.T, precision=hp) + b.T
        if act == "tanh":
            h = jnp.tanh(h)
        else:
            z = beta * h
            h = (jnp.maximum(z, 0.0) + jnp.log1p(jnp.exp(-jnp.abs(z)))) / beta
    return jnp.dot(h, weights[-1].T, precision=hp) + biases[-1].T


if __name__ == "__main__":
    # t is the time coordinate, x the spatial coordinates;
    # input_dim = dim(t) + dim(x).  N deliberately NOT a multiple of tile_n
    # to exercise the ragged (masked) last block, and large enough that the
    # grid has 4 steps (2 per TensorCore on v7x).
    N = 2000
    dim_t, dim_x = 1, 2
    input_dim = dim_t + dim_x
    hidden_list_u = [32, 32]        # args.hidden_list_u

    key = jax.random.PRNGKey(0)
    key, kt, kx = jax.random.split(key, 3)
    t = jax.random.normal(kt, (N, dim_t), jnp.float32)
    x = jax.random.normal(kx, (N, dim_x), jnp.float32)

    weights, biases = init_params(key, input_dim, hidden_list_u)

    # TODO(synk): tau_sp auto-selection (sqrt of param count) is init-time
    # config in the torch module; here beta is passed explicitly.
    #
    # Tolerance note: the hidden-layer contraction is pinned to
    # Precision.DEFAULT (bf16 MXU passes with f32 accumulation).  Against the
    # full-f32 reference the worst-case deviation of this 3->32->32->1 MLP is
    # ~1e-3; on f32-pass defaults it is ~1e-6.  5e-3 covers both
    # deterministically.
    tol = 5e-3
    for act_u in ("tanh", "softplus"):
        out = u_net_forward(t, x, weights, biases, act=act_u, beta=1.0,
                            tile_n=512)
        out = jax.block_until_ready(out)
        ref = reference_forward(t, x, weights, biases, act=act_u, beta=1.0)
        assert out.shape == (N, 1)
        err = float(jnp.max(jnp.abs(out - ref)))
        assert err < tol, (act_u, err)

    print("KERNEL_OK")
</pallas_src>

<mosaic_0001>
module attributes {stable_mosaic.version = 11 : i64} {
  func.func @_mlp_kernel(%arg0: i32, %arg1: memref<3x512xf32, #tpu.memory_space<vmem>>, %arg2: memref<32x3xf32, #tpu.memory_space<vmem>>, %arg3: memref<32x1xf32, #tpu.memory_space<vmem>>, %arg4: memref<32x32xf32, #tpu.memory_space<vmem>>, %arg5: memref<32x1xf32, #tpu.memory_space<vmem>>, %arg6: memref<32x1xf32, #tpu.memory_space<vmem>>, %arg7: memref<1x1xf32, #tpu.memory_space<vmem>>, %arg8: memref<1x512xf32, #tpu.memory_space<vmem>>) attributes {dimension_semantics = [#tpu.dimension_semantics<parallel>], iteration_bounds = array<i64: 4>, scalar_prefetch = 0 : i64, scratch_operands = 0 : i64, tpu.core_type = #tpu.core_type<tc>, window_params = [{transform_indices = @transform_0, window_bounds = array<i64: 3, 512>}, {pipeline_mode = #tpu.pipeline_mode<synchronous>, transform_indices = @transform_1, window_bounds = array<i64: 32, 3>}, {pipeline_mode = #tpu.pipeline_mode<synchronous>, transform_indices = @transform_2, window_bounds = array<i64: 32, 1>}, {pipeline_mode = #tpu.pipeline_mode<synchronous>, transform_indices = @transform_3, window_bounds = array<i64: 32, 32>}, {pipeline_mode = #tpu.pipeline_mode<synchronous>, transform_indices = @transform_4, window_bounds = array<i64: 32, 1>}, {pipeline_mode = #tpu.pipeline_mode<synchronous>, transform_indices = @transform_5, window_bounds = array<i64: 32, 1>}, {pipeline_mode = #tpu.pipeline_mode<synchronous>, transform_indices = @transform_6, window_bounds = array<i64: 1, 1>}, {transform_indices = @transform_7, window_bounds = array<i64: 1, 512>}]} {
    %c0 = arith.constant 0 : index
    %c0_0 = arith.constant 0 : index
    %0 = vector.load %arg1[%c0, %c0_0] : memref<3x512xf32, #tpu.memory_space<vmem>>, vector<3x512xf32>
    %c0_1 = arith.constant 0 : index
    %c0_2 = arith.constant 0 : index
    %1 = vector.load %arg2[%c0_1, %c0_2] : memref<32x3xf32, #tpu.memory_space<vmem>>, vector<32x3xf32>
    %c0_3 = arith.constant 0 : index
    %c0_4 = arith.constant 0 : index
    %2 = vector.load %arg3[%c0_3, %c0_4] : memref<32x1xf32, #tpu.memory_space<vmem>>, vector<32x1xf32>
    %3 = vector.extract_strided_slice %1 {offsets = [0, 0], sizes = [32, 1], strides = [1, 1]} : vector<32x3xf32> to vector<32x1xf32>
    %4 = vector.extract_strided_slice %0 {offsets = [0, 0], sizes = [1, 512], strides = [1, 1]} : vector<3x512xf32> to vector<1x512xf32>
    %5 = vector.broadcast %3 : vector<32x1xf32> to vector<32x512xf32>
    %6 = vector.broadcast %4 : vector<1x512xf32> to vector<32x512xf32>
    %7 = arith.mulf %5, %6 : vector<32x512xf32>
    %8 = vector.broadcast %2 : vector<32x1xf32> to vector<32x512xf32>
    %9 = arith.addf %8, %7 : vector<32x512xf32>
    %10 = vector.extract_strided_slice %1 {offsets = [0, 1], sizes = [32, 1], strides = [1, 1]} : vector<32x3xf32> to vector<32x1xf32>
    %11 = vector.extract_strided_slice %0 {offsets = [1, 0], sizes = [1, 512], strides = [1, 1]} : vector<3x512xf32> to vector<1x512xf32>
    %12 = vector.broadcast %10 : vector<32x1xf32> to vector<32x512xf32>
    %13 = vector.broadcast %11 : vector<1x512xf32> to vector<32x512xf32>
    %14 = arith.mulf %12, %13 : vector<32x512xf32>
    %15 = arith.addf %9, %14 : vector<32x512xf32>
    %16 = vector.extract_strided_slice %1 {offsets = [0, 2], sizes = [32, 1], strides = [1, 1]} : vector<32x3xf32> to vector<32x1xf32>
    %17 = vector.extract_strided_slice %0 {offsets = [2, 0], sizes = [1, 512], strides = [1, 1]} : vector<3x512xf32> to vector<1x512xf32>
    %18 = vector.broadcast %16 : vector<32x1xf32> to vector<32x512xf32>
    %19 = vector.broadcast %17 : vector<1x512xf32> to vector<32x512xf32>
    %20 = arith.mulf %18, %19 : vector<32x512xf32>
    %21 = arith.addf %15, %20 : vector<32x512xf32>
    %22 = math.tanh %21 : vector<32x512xf32>
    %c0_5 = arith.constant 0 : index
    %c0_6 = arith.constant 0 : index
    %23 = vector.load %arg4[%c0_5, %c0_6] : memref<32x32xf32, #tpu.memory_space<vmem>>, vector<32x32xf32>
    %c0_7 = arith.constant 0 : index
    %c0_8 = arith.constant 0 : index
    %24 = vector.load %arg5[%c0_7, %c0_8] : memref<32x1xf32, #tpu.memory_space<vmem>>, vector<32x1xf32>
    %cst = arith.constant dense<0.000000e+00> : vector<32x512xf32>
    %25 = tpu.matmul %23, %22, %cst {dimension_numbers = #tpu.dot_dimension_numbers<[1], [0], [0], [1], [0, 0, 1, 1], [], []>} : vector<32x32xf32>, vector<32x512xf32>, vector<32x512xf32> -> vector<32x512xf32>
    %26 = vector.broadcast %24 : vector<32x1xf32> to vector<32x512xf32>
    %27 = arith.addf %25, %26 : vector<32x512xf32>
    %28 = math.tanh %27 : vector<32x512xf32>
    %c0_9 = arith.constant 0 : index
    %c0_10 = arith.constant 0 : index
    %29 = vector.load %arg6[%c0_9, %c0_10] : memref<32x1xf32, #tpu.memory_space<vmem>>, vector<32x1xf32>
    %c0_11 = arith.constant 0 : index
    %c0_12 = arith.constant 0 : index
    %30 = vector.load %arg7[%c0_11, %c0_12] : memref<1x1xf32, #tpu.memory_space<vmem>>, vector<1x1xf32>
    %31 = vector.broadcast %29 : vector<32x1xf32> to vector<32x512xf32>
    %32 = arith.mulf %31, %28 : vector<32x512xf32>
    %cst_13 = arith.constant dense<0.000000e+00> : vector<512xf32>
    %33 = vector.multi_reduction <add>, %32, %cst_13 [0] : vector<32x512xf32> to vector<512xf32>
    %34 = vector.shape_cast %33 : vector<512xf32> to vector<1x512xf32>
    %35 = vector.broadcast %30 : vector<1x1xf32> to vector<1x512xf32>
    %36 = arith.addf %34, %35 : vector<1x512xf32>
    %c0_14 = arith.constant 0 : index
    %c0_15 = arith.constant 0 : index
    %37 = vector.load %arg8[%c0_14, %c0_15] : memref<1x512xf32, #tpu.memory_space<vmem>>, vector<1x512xf32>
    tpu.vector_store %arg8[%c0_14, %c0_15], %36 {strides = array<i32>} : memref<1x512xf32, #tpu.memory_space<vmem>>, vector<1x512xf32>,
    return
  }
  func.func @transform_0(%arg0: i32) -> (i32, i32) {
    %c0_i32 = arith.constant 0 : i32
    %c0_i32_0 = arith.constant 0 : i32
    return %c0_i32, %arg0 : i32, i32
  }
  func.func @transform_1(%arg0: i32) -> (i32, i32) {
    %c0_i32 = arith.constant 0 : i32
    %c0_i32_0 = arith.constant 0 : i32
    %c0_i32_1 = arith.constant 0 : i32
    return %c0_i32, %c0_i32_0 : i32, i32
  }
  func.func @transform_2(%arg0: i32) -> (i32, i32) {
    %c0_i32 = arith.constant 0 : i32
    %c0_i32_0 = arith.constant 0 : i32
    %c0_i32_1 = arith.constant 0 : i32
    return %c0_i32, %c0_i32_0 : i32, i32
  }
  func.func @transform_3(%arg0: i32) -> (i32, i32) {
    %c0_i32 = arith.constant 0 : i32
    %c0_i32_0 = arith.constant 0 : i32
    %c0_i32_1 = arith.constant 0 : i32
    return %c0_i32, %c0_i32_0 : i32, i32
  }
  func.func @transform_4(%arg0: i32) -> (i32, i32) {
    %c0_i32 = arith.constant 0 : i32
    %c0_i32_0 = arith.constant 0 : i32
    %c0_i32_1 = arith.constant 0 : i32
    return %c0_i32, %c0_i32_0 : i32, i32
  }
  func.func @transform_5(%arg0: i32) -> (i32, i32) {
    %c0_i32 = arith.constant 0 : i32
    %c0_i32_0 = arith.constant 0 : i32
    %c0_i32_1 = arith.constant 0 : i32
    return %c0_i32, %c0_i32_0 : i32, i32
  }
  func.func @transform_6(%arg0: i32) -> (i32, i32) {
    %c0_i32 = arith.constant 0 : i32
    %c0_i32_0 = arith.constant 0 : i32
    %c0_i32_1 = arith.constant 0 : i32
    return %c0_i32, %c0_i32_0 : i32, i32
  }
  func.func @transform_7(%arg0: i32) -> (i32, i32) {
    %c0_i32 = arith.constant 0 : i32
    %c0_i32_0 = arith.constant 0 : i32
    return %c0_i32, %arg0 : i32, i32
  }
}

</mosaic_0001>

<bundles_post_ra>
// kernel: tpu_custom_call.1
= control target key start
LH: loop header
LB: loop body
LE: loop exit
PB: predicated region body
PF: predicated region fallthrough
CT: control target
= control target key end

     0   :  { %s1580_s0 = inlined_call_operand.vmem [shape: f32[3,2000], index: 0, kind: input, shape index: {}]   ;;  %s1581_s1 = inlined_call_operand.vmem [shape: f32[32,3], index: 1, kind: input, shape index: {}]   ;;  %s1582_s2 = inlined_call_operand.vmem [shape: f32[32,1], index: 2, kind: input, shape index: {}]   ;;  %s1583_s3 = inlined_call_operand.vmem [shape: f32[32,32], index: 3, kind: input, shape index: {}]   ;;  %s1584_s4 = inlined_call_operand.vmem [shape: f32[32,1], index: 4, kind: input, shape index: {}]   ;;  %s1585_s5 = inlined_call_operand.vmem [shape: f32[32,1], index: 5, kind: input, shape index: {}]   ;;  %s1586_s6 = inlined_call_operand.<no memory space> [shape: f32[1,1], index: 6, kind: input, shape index: {}]   ;;  %s1587_s7 = inlined_call_operand.hbm [shape: f32[1,2000], index: 7, kind: output, shape index: {}]  }
   0x1   :  { %v12_v0 = vstv %s1586_s6 }
   0x2   :  { %13 = vst [vmem:[#allocation2] sm:$0x1] %v12_v0 }
   0x3   :  { %14 = vsyncpa [#allocation4], 0 }
   0x4   :  { %16 = vsyncpa [#allocation4 + $0x1], 0  ;;  %s1289_s26 = smov 0   ;;  %s1291_s27 = smov 0  }
   0x5   :  { %s1293_s28 = smov 0   ;;  %s1295_s29 = smov 0  }
   0x6 LB: > { %s1310_s6 = sadd.s32 4294967295, %s1238_s29   ;;  %s1019_s30 = sadd.s32 4294967294, %s1238_s29   ;;  %s1238_s29 = sphi %s1295_s29, %s1593_s29   ;;  %s1234_s28 = sphi %s1293_s28, %s1592_s28   ;;  %s1230_s27 = sphi %s1291_s27, %s1591_s27   ;;  %s1226_s26 = sphi %s1289_s26, %s1590_s26  }
   0x7   : > { %s1314_s8 = sadd.s32 1, %s1238_s29   ;;  %s181_s9 = sadd.s32 1, %s1234_s28 }
   0x8   : > { %s178_s10 = ssub.s32 %s1238_s29, %s1314_s8  ;;  %p191_p0 = scmp.ne.s32.totalorder %s1234_s28, %s1230_s27 }
   0x9   : > { %p179_p1 = scmp.eq.s32.totalorder %s178_s10, 0  ;;  %p192_p2 = scmp.eq.s32.totalorder %s1310_s6, 3 }
   0xa   : > { %p197_p3 = scmp.ne.s32.totalorder %s1230_s27, %s1226_s26  ;;  %p198_p4 = scmp.eq.s32.totalorder %s1019_s30, 3 }
   0xb   : > { %s1325_s11 = scalar_select %p179_p1, %s1234_s28, %s181_s9  }
   0xc   : > { %p1327_p5 = por %p192_p2, %p191_p0  ;;  %p1331_p6 = por %p198_p4, %p197_p3 }
   0xd   : > { %p1022_p7 = scmp.ge.s32.totalorder %s1238_s29, 1  ;;  %p243_p8 = scmp.lt.s32.totalorder %s1238_s29, 5 }
   0xf   : > { %p244_p9 = pnand %p1022_p7, %p243_p8 }
  0x10   : > { %v288_v1 = vld [vmem:[%s1582_s2] sm:$0xff] (!%p244_p9)  ;;  %v1240_v3 = vmov (!%p244_p9), 0   ;;  %v289_v4 = vld [vmem:[%s1582_s2 + $0x8] sm:$0xff] (!%p244_p9)  ;;  %v287_v6 = vld [vmem:[%s1581_s1 + $0x18] sm:$0xff] (!%p244_p9)  ;;  %v1241_v7 = vmov (!%p244_p9), 1   ;;  %v1242_v10 = vmov (!%p244_p9), 2   ;;  %v314_v22 = vlaneseq (!%p244_p9) }
  0x11   : > { %247 = sbr.rel (%p244_p9) target bundleno = 487 (0x1e7), region = 48  ;;  %v284_v2 = vld [vmem:[%s1581_s1] sm:$0xff] (!%p244_p9)  ;;  %1101 = vset.pattern.permute.xlu1 (!%p244_p9), %v1240_v3  ;;  %1100 = vset.pattern.permute.xlu0 (!%p244_p9), %v1240_v3  ;;  %v285_v5 = vld [vmem:[%s1581_s1 + $0x8] sm:$0xff] (!%p244_p9)  ;;  %v290_v8 = vld [vmem:[%s1582_s2 + $0x10] sm:$0xff] (!%p244_p9)  ;;  %v1243_v12 = vmov (!%p244_p9), 0.0   ;;  %s1024_s16 = sshll.u32 (!%p244_p9), %s1310_s6, 2 }
  0x12   : > { %368 = vperm.xlu1 (!%p244_p9), %1101, %v288_v1   ;;  %294 = vperm.xlu0 (!%p244_p9), %1100, %v284_v2   ;;  %v286_v9 = vld [vmem:[%s1581_s1 + $0x10] sm:$0xff] (!%p244_p9)  ;;  %v291_v11 = vld [vmem:[%s1582_s2 + $0x18] sm:$0xff] (!%p244_p9)  ;;  %v590_v13 = vld [vmem:[%s1584_s4] sm:$0xff] (!%p244_p9)  ;;  %p276_p10 = scmp.lt.s32.totalorder (!%p244_p9), %s1024_s16, 15  ;;  %v1389_v23 = vshrl.u32 (!%p244_p9), %v314_v22, 7  ;;  %vm614_vm0 = vcmask (!%p244_p9), 261120  }
  0x13   : > { %691 = vmatprep.mubr.f32.mxu0 (!%p244_p9), %v1243_v12  ;;  %780 = vmatprep.mubr.f32.mxu1 (!%p244_p9), %v1243_v12  ;;  %v592_v14 = vld [vmem:[%s1584_s4 + $0x10] sm:$0xff] (!%p244_p9)  ;;  %v591_v15 = vld [vmem:[%s1584_s4 + $0x8] sm:$0xff] (!%p244_p9)  ;;  %v593_v17 = vld [vmem:[%s1584_s4 + $0x18] sm:$0xff] (!%p244_p9)  ;;  %s272_s14 = sand.u32 (!%p244_p9), 1, %s1230_s27   ;;  %vm942_vm1 = vcmp.lt.s32.totalorder (!%p244_p9), %v314_v22, 512 }
  0x14   : > { %v822_v16 = vld [vmem:[%s1585_s5 + $0x8] sm:$0xff] (!%p244_p9)  ;;  %v824_v18 = vld [vmem:[%s1585_s5 + $0x18] sm:$0xff] (!%p244_p9)  ;;  %v821_v19 = vld [vmem:[%s1585_s5] sm:$0xff] (!%p244_p9)  ;;  %v1395_v25 = vsub.s32 (!%p244_p9), 0, %v1389_v23  ;;  %v320_v26 = vsub.s32 (!%p244_p9), 4, %v1389_v23  ;;  %v420_v36 = vsub.s32 (!%p244_p9), 1, %v1389_v23 }
  0x15   : > { %v823_v20 = vld [vmem:[%s1585_s5 + $0x10] sm:$0xff] (!%p244_p9)  ;;  %v825_v21 = vld [vmem:[#allocation2] sm:$0x1] (!%p244_p9)  ;;  %v424_v37 = vsub.s32 (!%p244_p9), 5, %v1389_v23  ;;  %v504_v38 = vsub.s32 (!%p244_p9), 2, %v1389_v23  ;;  %v508_v39 = vsub.s32 (!%p244_p9), 6, %v1389_v23 }
  0x16   : > { %373 = vperm.xlu1 (!%p244_p9), %1101, %v289_v4   ;;  %299 = vperm.xlu0 (!%p244_p9), %1100, %v285_v5   ;;  %s1023_s15 = sshll.u32 (!%p244_p9), %s272_s14, 2  ;;  %s946_s22 = scalar_lea.sflag (!%p244_p9), [#allocation4], %s272_s14 }
  0x18   : > { %s1595_s16 = smov (!%p276_p10, %s1024_s16), 15 }
  0x19   : > { %s1025_s17 = sshll.u32 %s1595_s16, 2  ;;  %s1039_s16 = sshll.u32 %s1310_s6, 6 }
  0x1a   : > { %1102 = vset.pattern.permute.xlu1 %v1241_v7  ;;  %309 = vperm.xlu0 %1100, %v287_v6   ;;  %s279_s20 = scalar_lea.vmem %s1580_s0, %s1025_s17  ;;  %s274_s17 = scalar_lea.vmem [#allocation3], %s1023_s15 }
  0x1b   : > { %407 = vperm.xlu1 %1102, %v285_v5   ;;  %v282_v28 = vld [vmem:[%s279_s20] sm:$0x77]  ;;  %v283_v29 = vld [vmem:[%s279_s20 + $0x8] sm:$0x77]  ;;  %s960_s18 = sshll.u32 %s274_s17, 4  ;;  %s1538_s21 = scalar_lea.hbm %s1587_s7, %s1039_s16  ;;  %s1540_s18 = int_to_ptr.vmem [resolvable:$true] %s960_s18 }
  0x1c   : > { %v317_v30 = vrot.slane %v282_v28, %v1395_v25  ;;  %v321_v31 = vrot.slane %v282_v28, %v320_v26  ;;  %v325_v32 = vrot.slane %v283_v29, %v1395_v25  ;;  %v329_v35 = vrot.slane %v283_v29, %v320_v26  ;;  %s1176_s23 = scalar_lea.vmem %s1540_s18, 64  ;;  %s1245_s6 = smov [#allocation3]  }
  0x1d   : > { %v421_v46 = vrot.slane %v282_v28, %v420_v36  ;;  %v425_v47 = vrot.slane %v282_v28, %v424_v37  ;;  %v429_v48 = vrot.slane %v283_v29, %v420_v36  ;;  %v433_v49 = vrot.slane %v283_v29, %v424_v37  ;;  %p1177_p11 = scmp.ne.s32.totalorder %s1540_s18, %s1176_s23  ;;  %s1180_s24 = sshll.u32 %s1245_s6, 4  ;;  %s1181_s24 = int_to_ptr.vmem [resolvable:$false] %s1180_s24 }
  0x1e   : > { %378 = vperm.xlu0 %1100, %v290_v8   ;;  %v1407_v40 = vrot.slane %v317_v30, %v1395_v25  ;;  %v1410_v41 = vrot.slane %v321_v31, %v1395_v25  ;;  %v1413_v42 = vrot.slane %v325_v32, %v1395_v25  ;;  %v1418_v44 = vrot.slane %v329_v35, %v1395_v25  ;;  %s1182_s25 = scalar_lea.vmem %s1181_s24, 128  ;;  %p1183_p0 = scmp.lt.s32.totalorder %s1540_s18, %s1181_s24 }
  0x1f   : > { %1103 = vset.pattern.permute.xlu1 %v1240_v3  ;;  %v505_v50 = vrot.slane %v282_v28, %v504_v38  ;;  %v509_v51 = vrot.slane %v282_v28, %v508_v39  ;;  %v513_v52 = vrot.slane %v283_v29, %v504_v38  ;;  %v517_v57 = vrot.slane %v283_v29, %v508_v39  ;;  %p1178_p12 = pnand %p1177_p11, %p1327_p5  ;;  %p1184_p1 = scmp.lt.s32.totalorder %s1182_s25, %s1176_s23 }
  0x20   : > { %304 = vperm.xlu1 %1103, %v286_v9   ;;  %v1426_v59 = vrot.slane %v421_v46, %v420_v36  ;;  %v1428_v60 = vrot.slane %v425_v47, %v420_v36  ;;  %v1430_v61 = vrot.slane %v429_v48, %v420_v36  ;;  %v1434_v63 = vrot.slane %v433_v49, %v420_v36 }
  0x21   : > { %v1436_v0 = vrot.slane %v505_v50, %v504_v38  ;;  %v1438_v1 = vrot.slane %v509_v51, %v504_v38  ;;  %p1179_p13 = pneg %p1178_p12  ;;  %p1185_p2 = por %p1184_p1, %p1183_p0 }
  0x22   : > { %1105 = vset.pattern.permute.xlu0 %v1241_v7 }
  0x23   : > { %403 = vperm.xlu0 %1105, %v284_v2   ;;  %p1186_p3 = pnand %p1185_p2, %p1179_p13 }
  0x24   : > { %1104 = vset.pattern.permute.xlu1 %v1242_v10 }
  0x25   : > { %487 = vperm.xlu1 %1104, %v284_v2   ;;  %v1440_v2 = vrot.slane %v513_v52, %v504_v38 }
  0x27   : > { %411 = vperm.xlu0 %1105, %v286_v9  }
  0x29   : > { %491 = vperm.xlu1 %1104, %v285_v5  }
  0x2b   : > { %1109 = vset.pattern.permute.xlu0 %v1242_v10 }
  0x2c   : > { %499 = vperm.xlu0 %1109, %v287_v6  }
  0x2d   : > { %1106 = vset.pattern.permute.xlu1 %v1240_v3 }
  0x2e   : > { %383 = vperm.xlu1 %1106, %v291_v11  }
  0x30   : > { %1111 = vset.pattern.permute.xlu0 %v1240_v3 }
  0x31   : > { %606 = vperm.xlu0 %1111, %v592_v14  }
  0x32   : > { %1107 = vset.pattern.permute.xlu1 %v1241_v7 }
  0x33   : > { %415 = vperm.xlu1 %1107, %v287_v6   ;;  %v1442_v6 = vrot.slane %v517_v57, %v504_v38 }
  0x35   : > { %833 = vperm.xlu0 %1111, %v822_v16  }
  0x37   : > { %1108 = vset.pattern.permute.xlu1 %v1242_v10 }
  0x38   : > { %495 = vperm.xlu1 %1108, %v286_v9  }
  0x39   : > { %843 = vperm.xlu0 %1111, %v824_v18  }
  0x3c   : > { %1110 = vset.pattern.permute.xlu1 %v1240_v3 }
  0x3d   : > { %596 = vperm.xlu1 %1110, %v590_v13  }
  0x41   : > { %601 = vperm.xlu1 %1110, %v591_v15  }
  0x45   : > { %611 = vperm.xlu1 %1110, %v593_v17  }
  0x49   : > { %828 = vperm.xlu1 %1110, %v821_v19  }
  0x4d   : > { %838 = vperm.xlu1 %1110, %v823_v20  }
  0x51   : > { %900 = vperm.xlu1 %1110, %v825_v21  }
  0x91   : > { %v369_v24 = vpop.permute.xlu1 %368  ;;  %v295_v27 = vpop.permute.xlu0 %294 }
  0x92   : > { %v350_v53 = vmul.f32 %v1407_v40, %v295_v27  ;;  %v351_v54 = vmul.f32 %v1410_v41, %v295_v27  ;;  %v352_v55 = vmul.f32 %v1413_v42, %v295_v27  ;;  %v353_v58 = vmul.f32 %v1418_v44, %v295_v27 }
  0x94   : > { %v386_v3 = vadd.f32 %v369_v24, %v350_v53  ;;  %v387_v4 = vadd.f32 %v369_v24, %v351_v54  ;;  %v388_v5 = vadd.f32 %v369_v24, %v352_v55  ;;  %v389_v7 = vadd.f32 %v369_v24, %v353_v58 }
  0x95   : > { %v1400_v33 = vpop.permute.xlu1 %373  ;;  %v300_v34 = vpop.permute.xlu0 %299 }
  0x96   : > { %v354_v8 = vmul.f32 %v1407_v40, %v300_v34  ;;  %v355_v9 = vmul.f32 %v1410_v41, %v300_v34  ;;  %v356_v10 = vmul.f32 %v1413_v42, %v300_v34  ;;  %v357_v17 = vmul.f32 %v1418_v44, %v300_v34 }
  0x98   : > { %v390_v34 = vadd.f32 %v1400_v33, %v354_v8  ;;  %v391_v35 = vadd.f32 %v1400_v33, %v355_v9  ;;  %v392_v36 = vadd.f32 %v1400_v33, %v356_v10  ;;  %v393_v38 = vadd.f32 %v1400_v33, %v357_v17 }
  0x99   : > { %v1415_v43 = vpop.permute.xlu0 %309 }
  0x9a   : > { %v408_v45 = vpop.permute.xlu1 %407 }
  0x9b   : > { %v458_v18 = vmul.f32 %v1426_v59, %v408_v45  ;;  %v459_v19 = vmul.f32 %v1428_v60, %v408_v45  ;;  %v460_v20 = vmul.f32 %v1430_v61, %v408_v45  ;;  %v461_v37 = vmul.f32 %v1434_v63, %v408_v45 }
  0x9d   : > { %v1423_v56 = vpop.permute.xlu0 %378  ;;  %v474_v49 = vadd.f32 %v458_v18, %v390_v34  ;;  %v475_v50 = vadd.f32 %v459_v19, %v391_v35  ;;  %v476_v51 = vadd.f32 %v460_v20, %v392_v36  ;;  %v477_v58 = vadd.f32 %v461_v37, %v393_v38 }
  0x9f   : > { %v1432_v62 = vpop.permute.xlu1 %304 }
  0xa0   : > { %v361_v17 = vmul.f32 %v1418_v44, %v1432_v62 }
  0xa2   : > { %v404_v11 = vpop.permute.xlu0 %403 }
  0xa3   : > { %v454_v13 = vmul.f32 %v1426_v59, %v404_v11  ;;  %v455_v14 = vmul.f32 %v1428_v60, %v404_v11  ;;  %v456_v15 = vmul.f32 %v1430_v61, %v404_v11  ;;  %v457_v16 = vmul.f32 %v1434_v63, %v404_v11 }
  0xa4   : > { %v488_v21 = vpop.permute.xlu1 %487  ;;  %v364_v11 = vmul.f32 %v1413_v42, %v1415_v43 }
  0xa5   : > { %v470_v24 = vadd.f32 %v454_v13, %v386_v3  ;;  %v471_v26 = vadd.f32 %v455_v14, %v387_v4  ;;  %v472_v27 = vadd.f32 %v456_v15, %v388_v5  ;;  %v473_v28 = vadd.f32 %v457_v16, %v389_v7 }
  0xa6   : > { %v538_v29 = vmul.f32 %v1436_v0, %v488_v21  ;;  %v539_v30 = vmul.f32 %v1438_v1, %v488_v21  ;;  %v540_v31 = vmul.f32 %v1440_v2, %v488_v21  ;;  %v541_v32 = vmul.f32 %v1442_v6, %v488_v21  ;;  %v412_v53 = vpop.permute.xlu0 %411 }
  0xa7   : > { %v362_v5 = vmul.f32 %v1407_v40, %v1415_v43  ;;  %v363_v7 = vmul.f32 %v1410_v41, %v1415_v43  ;;  %v365_v13 = vmul.f32 %v1418_v44, %v1415_v43  ;;  %v358_v14 = vmul.f32 %v1407_v40, %v1432_v62 }
  0xa8   : > { %v554_v39 = vadd.f32 %v538_v29, %v470_v24  ;;  %v555_v46 = vadd.f32 %v539_v30, %v471_v26  ;;  %v556_v47 = vadd.f32 %v540_v31, %v472_v27  ;;  %v492_v48 = vpop.permute.xlu1 %491  ;;  %v557_v52 = vadd.f32 %v541_v32, %v473_v28 }
  0xa9   : > { %v542_v54 = vmul.f32 %v1436_v0, %v492_v48  ;;  %v543_v55 = vmul.f32 %v1438_v1, %v492_v48  ;;  %v544_v57 = vmul.f32 %v1440_v2, %v492_v48  ;;  %v545_v33 = vmul.f32 %v1442_v6, %v492_v48 }
  0xaa   : > { %1112 = vtanh.f32 %v554_v39  ;;  %v359_v15 = vmul.f32 %v1410_v41, %v1432_v62  ;;  %v360_v16 = vmul.f32 %v1413_v42, %v1432_v62  ;;  %v462_v18 = vmul.f32 %v1426_v59, %v412_v53 }
  0xab   : > { %1114 = vtanh.f32 %v555_v46  ;;  %v558_v45 = vadd.f32 %v542_v54, %v474_v49  ;;  %v559_v3 = vadd.f32 %v543_v55, %v475_v50  ;;  %v560_v4 = vadd.f32 %v544_v57, %v476_v51  ;;  %v500_v10 = vpop.permute.xlu0 %499 }
  0xac   : > { %1116 = vtanh.f32 %v556_v47  ;;  %v561_v8 = vadd.f32 %v545_v33, %v477_v58  ;;  %v463_v19 = vmul.f32 %v1428_v60, %v412_v53  ;;  %v550_v43 = vmul.f32 %v1436_v0, %v500_v10 }
  0xad   : > { %1118 = vtanh.f32 %v557_v52  ;;  %v384_v9 = vpop.permute.xlu1 %383  ;;  %v551_v21 = vmul.f32 %v1438_v1, %v500_v10  ;;  %v552_v42 = vmul.f32 %v1440_v2, %v500_v10  ;;  %v553_v44 = vmul.f32 %v1442_v6, %v500_v10 }
  0xae   : > { %1120 = vtanh.f32 %v558_v45  ;;  %v398_v40 = vadd.f32 %v384_v9, %v362_v5  ;;  %v399_v20 = vadd.f32 %v384_v9, %v363_v7  ;;  %v400_v41 = vadd.f32 %v384_v9, %v364_v11 }
  0xaf   : > { %1122 = vtanh.f32 %v559_v3  ;;  %v401_v24 = vadd.f32 %v384_v9, %v365_v13  ;;  %v394_v31 = vadd.f32 %v1423_v56, %v358_v14  ;;  %v395_v32 = vadd.f32 %v1423_v56, %v359_v15 }
  0xb0   : > { %1124 = vtanh.f32 %v560_v4  ;;  %v464_v34 = vmul.f32 %v1430_v61, %v412_v53  ;;  %v465_v35 = vmul.f32 %v1434_v63, %v412_v53  ;;  %v397_v47 = vadd.f32 %v1423_v56, %v361_v17 }
  0xb1   : > { %1126 = vtanh.f32 %v561_v8  ;;  %v478_v48 = vadd.f32 %v462_v18, %v394_v31  ;;  %v479_v49 = vadd.f32 %v463_v19, %v395_v32 }
  0xb2   : > { %v416_v26 = vpop.permute.xlu1 %415 }
  0xb3   : > { %v466_v62 = vmul.f32 %v1426_v59, %v416_v26  ;;  %v467_v27 = vmul.f32 %v1428_v60, %v416_v26  ;;  %v468_v28 = vmul.f32 %v1430_v61, %v416_v26  ;;  %v469_v29 = vmul.f32 %v1434_v63, %v416_v26  ;;  %v588_v26 = vld [vmem:[%s1583_s3 + $0x10] sm:$0xff] }
  0xb4   : > { %v1113_v30 = vpop.eup %1112  ;;  %v396_v60 = vadd.f32 %v1423_v56, %v360_v16  ;;  %v481_v56 = vadd.f32 %v465_v35, %v397_v47 }
  0xb5   : > { %v1115_v36 = vpop.eup %1114  ;;  %v482_v37 = vadd.f32 %v466_v62, %v398_v40  ;;  %v483_v38 = vadd.f32 %v467_v27, %v399_v20  ;;  %v484_v39 = vadd.f32 %v468_v28, %v400_v41  ;;  %v485_v59 = vadd.f32 %v469_v29, %v401_v24  ;;  %v586_v41 = vld [vmem:[%s1583_s3] sm:$0xff]  ;;  %v587_v24 = vld [vmem:[%s1583_s3 + $0x8] sm:$0xff] }
  0xb6   : > { %v1117_v46 = vpop.eup %1116  ;;  %v480_v3 = vadd.f32 %v464_v34, %v396_v60  ;;  %v607_v60 = vpop.permute.xlu0 %606 }
  0xb7   : > { %v1119_v50 = vpop.eup %1118  ;;  %v566_v51 = vadd.f32 %v550_v43, %v482_v37  ;;  %v567_v52 = vadd.f32 %v551_v21, %v483_v38  ;;  %v568_v54 = vadd.f32 %v552_v42, %v484_v39  ;;  %v569_v55 = vadd.f32 %v553_v44, %v485_v59  ;;  %v496_v61 = vpop.permute.xlu1 %495  ;;  %v589_v42 = vld [vmem:[%s1583_s3 + $0x18] sm:$0xff] }
  0xb8   : > { %v1121_v57 = vpop.eup %1120  ;;  %v546_v63 = vmul.f32 %v1436_v0, %v496_v61  ;;  %v547_v53 = vmul.f32 %v1438_v1, %v496_v61  ;;  %v548_v58 = vmul.f32 %v1440_v2, %v496_v61  ;;  %v549_v33 = vmul.f32 %v1442_v6, %v496_v61 }
  0xb9   : > { %v1123_v45 = vpop.eup %1122  ;;  %1128 = vtanh.f32 %v566_v51  ;;  %v1042_v8 = vpack.c.bf16 %v1121_v57, %v1113_v30 }
  0xba   : > { %v1125_v4 = vpop.eup %1124  ;;  %1130 = vtanh.f32 %v567_v52  ;;  %v562_v5 = vadd.f32 %v546_v63, %v478_v48  ;;  %v563_v7 = vadd.f32 %v547_v53, %v479_v49  ;;  %v564_v10 = vadd.f32 %v548_v58, %v480_v3 }
  0xbb   : > { %v1127_v9 = vpop.eup %1126  ;;  %1132 = vtanh.f32 %v568_v54  ;;  %v1040_v11 = vpack.c.bf16 %v1123_v45, %v1115_v36  ;;  %v1050_v0 = vpack.c.bf16 %v1125_v4, %v1117_v46  ;;  %v565_v1 = vadd.f32 %v549_v33, %v481_v56 }
  0xbc   : > { %1134 = vtanh.f32 %v569_v55  ;;  %v1048_v13 = vpack.c.bf16 %v1127_v9, %v1119_v50  ;;  %v597_v44 = vpop.permute.xlu1 %596 }
  0xbd   : > { %1136 = vtanh.f32 %v562_v5  ;;  %1041 = vmatprep.subr.bf16.mxu0 %v1040_v11 }
  0xbe   : > { %1138 = vtanh.f32 %v563_v7  ;;  %1049 = vmatprep.subr.bf16.mxu1 %v1048_v13  ;;  %1043 = vmatpush1.bf16.msra.mxu0 %v1042_v8 }
  0xbf   : > { %1140 = vtanh.f32 %v564_v10  ;;  %1051 = vmatpush1.bf16.msra.mxu1 %v1050_v0  ;;  %v834_v0 = vpop.permute.xlu0 %833 }
  0xc0   : > { %1142 = vtanh.f32 %v565_v1  ;;  %v602_v31 = vpop.permute.xlu1 %601 }
  0xc3   : > { %v1129_v2 = vpop.eup %1128 }
  0xc4   : > { %v1131_v6 = vpop.eup %1130  ;;  %v612_v49 = vpop.permute.xlu1 %611 }
  0xc5   : > { %v1133_v14 = vpop.eup %1132 }
  0xc6   : > { %v1135_v15 = vpop.eup %1134 }
  0xc7   : > { %v1137_v16 = vpop.eup %1136 }
  0xc8   : > { %v1139_v17 = vpop.eup %1138  ;;  %v1046_v18 = vpack.c.bf16 %v1129_v2, %v1137_v16  ;;  %v829_v5 = vpop.permute.xlu1 %828 }
  0xc9   : > { %v1141_v19 = vpop.eup %1140  ;;  %v1044_v43 = vpack.c.bf16 %v1131_v6, %v1139_v17 }
  0xca   : > { %v1143_v40 = vpop.eup %1142  ;;  %v1054_v20 = vpack.c.bf16 %v1133_v14, %v1141_v19 }
  0xcb   : > { %1045 = vmatprep.subr.bf16.mxu0 %v1044_v43  ;;  %v1052_v21 = vpack.c.bf16 %v1135_v15, %v1143_v40 }
  0xcc   : > { %1047 = vmatpush1.bf16.msra.mxu0 %v1046_v18  ;;  %v839_v40 = vpop.permute.xlu1 %838 }
  0xcd   : > { %1053 = vmatprep.subr.bf16.mxu1 %v1052_v21 }
  0xce   : > { %1055 = vmatpush1.bf16.msra.mxu1 %v1054_v20 }
  0xcf   : > { %1026 = vmatmul.mubr.msk.f32.vlgmr.msra.gmra.mrb[0].mxu0 %vm614_vm0, %v586_v41 }
  0xd0   : > { %697 = vmatprep.mubr.f32.mxu0 %v1243_v12 }
  0xd1   : > { %1030 = vmatmul.mubr.msk.f32.vlgmr.msra.gmra.mrb[0].mxu1 %vm614_vm0, %v586_v41 }
  0xd2   : > { %786 = vmatprep.mubr.f32.mxu1 %v1243_v12 }
  0xd3   : > { %1027 = vmatmul.mubr.msk.f32.gmra.mrb[2].mxu0 %vm614_vm0, %v587_v24 }
  0xd4   : > { %703 = vmatprep.mubr.f32.mxu0 %v1243_v12 }
  0xd5   : > { %1031 = vmatmul.mubr.msk.f32.gmra.mrb[2].mxu1 %vm614_vm0, %v587_v24 }
  0xd6   : > { %792 = vmatprep.mubr.f32.mxu1 %v1243_v12 }
  0xd7   : > { %1028 = vmatmul.mubr.msk.f32.gmra.mrb[4].mxu0 %vm614_vm0, %v588_v26 }
  0xd8   : > { %709 = vmatprep.mubr.f32.mxu0 %v1243_v12 }
  0xd9   : > { %1032 = vmatmul.mubr.msk.f32.gmra.mrb[4].mxu1 %vm614_vm0, %v588_v26 }
  0xda   : > { %798 = vmatprep.mubr.f32.mxu1 %v1243_v12 }
  0xdb   : > { %1029 = vmatmul.mubr.msk.f32.gmra.mrb[6].mxu0 %vm614_vm0, %v589_v42 }
  0xdd   : > { %1033 = vmatmul.mubr.msk.f32.gmra.mrb[6].mxu1 %vm614_vm0, %v589_v42 }
 0x1a2   : > { %v693_v62 = vpop.f32.mrb[0].mxu0 }
 0x1a3   : > { %v694_v27 = vadd.f32 %v693_v62, %v597_v44  ;;  %v695_v28 = vpop.f32.mrb[1].mxu0 }
 0x1a4   : > { %v782_v29 = vpop.f32.mrb[0].mxu1  ;;  %v696_v30 = vadd.f32 %v695_v28, %v597_v44 }
 0x1a5   : > { %1144 = vtanh.f32 %v694_v27  ;;  %v783_v32 = vadd.f32 %v782_v29, %v597_v44  ;;  %v784_v34 = vpop.f32.mrb[1].mxu1 }
 0x1a6   : > { %1146 = vtanh.f32 %v696_v30  ;;  %v785_v35 = vadd.f32 %v784_v34, %v597_v44  ;;  %v699_v36 = vpop.f32.mrb[2].mxu0 }
 0x1a7   : > { %1148 = vtanh.f32 %v783_v32  ;;  %v700_v37 = vadd.f32 %v699_v36, %v602_v31  ;;  %v701_v12 = vpop.f32.mrb[3].mxu0 }
 0x1a8   : > { %1150 = vtanh.f32 %v785_v35  ;;  %v788_v38 = vpop.f32.mrb[2].mxu1  ;;  %v702_v39 = vadd.f32 %v701_v12, %v602_v31  ;;  %v844_v35 = vpop.permute.xlu0 %843 }
 0x1a9   : > { %1152 = vtanh.f32 %v700_v37  ;;  %v789_v59 = vadd.f32 %v788_v38, %v602_v31  ;;  %v790_v46 = vpop.f32.mrb[3].mxu1 }
 0x1aa   : > { %1154 = vtanh.f32 %v702_v39  ;;  %v791_v47 = vadd.f32 %v790_v46, %v602_v31  ;;  %v705_v48 = vpop.f32.mrb[4].mxu0 }
 0x1ab   : > { %1156 = vtanh.f32 %v789_v59  ;;  %v706_v50 = vadd.f32 %v705_v48, %v607_v60  ;;  %v707_v51 = vpop.f32.mrb[5].mxu0 }
 0x1ac   : > { %1158 = vtanh.f32 %v791_v47  ;;  %v794_v52 = vpop.f32.mrb[4].mxu1  ;;  %v708_v54 = vadd.f32 %v707_v51, %v607_v60 }
 0x1ad   : > { %1160 = vtanh.f32 %v706_v50  ;;  %v795_v55 = vadd.f32 %v794_v52, %v607_v60  ;;  %v796_v61 = vpop.f32.mrb[5].mxu1 }
 0x1ae   : > { %1162 = vtanh.f32 %v708_v54  ;;  %v797_v57 = vadd.f32 %v796_v61, %v607_v60  ;;  %v711_v63 = vpop.f32.mrb[6].mxu0 }
 0x1af   : > { %v1145_v53 = vpop.eup %1144  ;;  %1164 = vtanh.f32 %v795_v55  ;;  %v712_v58 = vadd.f32 %v711_v63, %v612_v49  ;;  %v713_v33 = vpop.f32.mrb[7].mxu0 }
 0x1b0   : > { %v1147_v45 = vpop.eup %1146  ;;  %1166 = vtanh.f32 %v797_v57  ;;  %v800_v3 = vpop.f32.mrb[6].mxu1  ;;  %v714_v56 = vadd.f32 %v713_v33, %v612_v49  ;;  %v846_v13 = vmul.f32 %v1145_v53, %v829_v5 }
 0x1b1   : > { %v1149_v4 = vpop.eup %1148  ;;  %1168 = vtanh.f32 %v712_v58  ;;  %v801_v7 = vadd.f32 %v800_v3, %v612_v49  ;;  %v802_v8 = vpop.f32.mrb[7].mxu1  ;;  %v847_v14 = vmul.f32 %v1147_v45, %v829_v5  ;;  %v1244_v3 = vmov 1966171168  }
 0x1b2   : > { %v1151_v9 = vpop.eup %1150  ;;  %1170 = vtanh.f32 %v714_v56  ;;  %v803_v10 = vadd.f32 %v802_v8, %v612_v49  ;;  %v848_v17 = vmul.f32 %v1149_v4, %v829_v5  ;;  %v918_v56 = vunpack.c.l.s4 %v1244_v3 }
 0x1b3   : > { %v1153_v11 = vpop.eup %1152  ;;  %1172 = vtanh.f32 %v801_v7  ;;  %v849_v20 = vmul.f32 %v1151_v9, %v829_v5  ;;  %v901_v7 = vpop.permute.xlu1 %900 }
 0x1b4   : > { %v1155_v1 = vpop.eup %1154  ;;  %v850_v2 = vmul.f32 %v1153_v11, %v834_v0  ;;  %1174 = vtanh.f32 %v803_v10 }
 0x1b5   : > { %v1157_v6 = vpop.eup %1156  ;;  %v851_v15 = vmul.f32 %v1155_v1, %v834_v0 }
 0x1b6   : > { %v1159_v16 = vpop.eup %1158  ;;  %v852_v18 = vmul.f32 %v1157_v6, %v834_v0  ;;  %v862_v19 = vadd.f32 %v850_v2, %v846_v13  ;;  %v919_v13 = vunpack.c.0.s8 %v918_v56  ;;  %v906_v2 = vrot.slane %v901_v7, %v1395_v25 }
 0x1b7   : > { %v1161_v43 = vpop.eup %1160  ;;  %v853_v21 = vmul.f32 %v1159_v16, %v834_v0  ;;  %v871_v41 = vadd.f32 %v851_v15, %v847_v14 }
 0x1b8   : > { %v1163_v24 = vpop.eup %1162  ;;  %v880_v26 = vadd.f32 %v852_v18, %v848_v17  ;;  %v854_v42 = vmul.f32 %v1161_v43, %v839_v40 }
 0x1b9   : > { %v1165_v44 = vpop.eup %1164  ;;  %v889_v62 = vadd.f32 %v853_v21, %v849_v20  ;;  %v855_v27 = vmul.f32 %v1163_v24, %v839_v40 }
 0x1ba   : > { %v1167_v28 = vpop.eup %1166  ;;  %v863_v29 = vadd.f32 %v862_v19, %v854_v42  ;;  %v856_v30 = vmul.f32 %v1165_v44, %v839_v40 }
 0x1bb   : > { %v1169_v31 = vpop.eup %1168  ;;  %v872_v32 = vadd.f32 %v871_v41, %v855_v27  ;;  %v857_v34 = vmul.f32 %v1167_v28, %v839_v40  ;;  %v922_v40 = vsub.s32 %v919_v13, %v1389_v23 }
 0x1bc   : > { %v1171_v36 = vpop.eup %1170  ;;  %v881_v37 = vadd.f32 %v880_v26, %v856_v30  ;;  %v858_v12 = vmul.f32 %v1169_v31, %v844_v35 }
 0x1bd   : > { %v1173_v38 = vpop.eup %1172  ;;  %v890_v39 = vadd.f32 %v889_v62, %v857_v34  ;;  %v859_v59 = vmul.f32 %v1171_v36, %v844_v35 }
 0x1be   : > { %v1175_v46 = vpop.eup %1174  ;;  %v864_v60 = vadd.f32 %v863_v29, %v858_v12  ;;  %v860_v47 = vmul.f32 %v1173_v38, %v844_v35 }
 0x1bf   : > { %v873_v48 = vadd.f32 %v872_v32, %v859_v59  ;;  %v861_v49 = vmul.f32 %v1175_v46, %v844_v35 }
 0x1c0   : > { %v865_v50 = vrot.slane %v864_v60, 4  ;;  %v882_v51 = vadd.f32 %v881_v37, %v860_v47 }
 0x1c1   : > { %v874_v52 = vrot.slane %v873_v48, 4  ;;  %v891_v54 = vadd.f32 %v890_v39, %v861_v49 }
 0x1c2   : > { %v866_v55 = vadd.f32 %v865_v50, %v864_v60  ;;  %v883_v61 = vrot.slane %v882_v51, 4 }
 0x1c3   : > { %v875_v57 = vadd.f32 %v874_v52, %v873_v48  ;;  %v892_v63 = vrot.slane %v891_v54, 4 }
 0x1c4   : > { %v867_v53 = vrot.slane %v866_v55, 2  ;;  %v884_v58 = vadd.f32 %v883_v61, %v882_v51 }
 0x1c5   : > { %v876_v33 = vrot.slane %v875_v57, 2  ;;  %v893_v45 = vadd.f32 %v892_v63, %v891_v54 }
 0x1c6   : > { %v868_v4 = vadd.f32 %v867_v53, %v866_v55  ;;  %v885_v5 = vrot.slane %v884_v58, 2 }
 0x1c7   : > { %v877_v8 = vadd.f32 %v876_v33, %v875_v57  ;;  %v894_v9 = vrot.slane %v893_v45, 2 }
 0x1c8   : > { %v886_v10 = vadd.f32 %v885_v5, %v884_v58  ;;  %v869_v11 = vrot.slane %v868_v4, 1 }
 0x1c9   : > { %v895_v0 = vadd.f32 %v894_v9, %v893_v45  ;;  %v878_v1 = vrot.slane %v877_v8, 1 }
 0x1ca   : > { %v870_v6 = vadd.f32 %v869_v11, %v868_v4  ;;  %v887_v14 = vrot.slane %v886_v10, 1 }
 0x1cb   : > { %v879_v15 = vadd.f32 %v878_v1, %v877_v8  ;;  %v896_v16 = vrot.slane %v895_v0, 1 }
 0x1cc   : > { %v888_v17 = vadd.f32 %v887_v14, %v886_v10  ;;  %v907_v18 = vadd.f32 %v906_v2, %v870_v6 }
 0x1cd   : > { %v897_v19 = vadd.f32 %v896_v16, %v895_v0  ;;  %v908_v43 = vadd.f32 %v906_v2, %v879_v15 }
 0x1ce   : > { %v909_v20 = vadd.f32 %v906_v2, %v888_v17 }
 0x1cf   : > { %v910_v21 = vadd.f32 %v906_v2, %v897_v19  ;;  %v915_v41 = vcombine.low %v907_v18, %v908_v43 }
 0x1d1   : > { %v916_v24 = vcombine.low %v909_v20, %v910_v21  ;;  %v923_v26 = vrot.slane %v915_v41, %v922_v40 }
 0x1d3   : > { %v930_v25 = vrot.slane %v916_v24, %v922_v40 }
 0x1d5   : > { %v931_v42 = vcombine.low %v923_v26, %v930_v25 }
 0x1d7   : > { %v938_v44 = vrot.slane %v931_v42, %v922_v40 }
 0x1d9   : > { %944 = vst.msk [vmem:[%s274_s17] sm:$0xf] %vm942_vm1, %v938_v44 }
 0x1da   : > { %1189 = shalt.err (!%p1186_p3)
}
 0x1db   : > { %s1190_s30 = scalar_lea.hbm %s1538_s21, 64  ;;  %s1194_s14 = scalar_lea.hbm %s1587_s7, 256 }
 0x1dc   : > { %p1191_p4 = scmp.ne.s32.totalorder %s1538_s21, %s1190_s30  ;;  %p1195_p9 = scmp.lt.u32.totalorder %s1538_s21, %s1587_s7 }
 0x1dd   : > { %p1196_p10 = scmp.lt.u32.totalorder %s1194_s14, %s1190_s30  ;;  %p1198_p12 = scmp.lt.u32.totalorder %s1190_s30, %s1538_s21 }
 0x1de   : > { %p1192_p7 = pnand %p1191_p4, %p1327_p5 }
 0x1df   : > { %p1197_p11 = por %p1196_p10, %p1195_p9 }
 0x1e0   : > { %p1193_p8 = pneg %p1192_p7 }
 0x1e1   : > { %p1199_p13 = por %p1198_p12, %p1197_p11 }
 0x1e3   : > { %p1200_p0 = pnand %p1199_p13, %p1193_p8 }
 0x1e5   : > { %1203 = shalt.err (!%p1200_p0)
}
 0x1e6   : > { %1056 = dma.vmem_to_hbm [thread:$0]  (%p1327_p5), %s1540_s18, 64, %s1538_s21, %s946_s22  }
 0x1e7 PF: > { %p1062_p1 = scmp.ge.s32.totalorder %s1238_s29, 2  ;;  %s972_s17 = sand.u32 1, %s1226_s26  }
 0x1e8   : > { %s973_s19 = scalar_lea.sflag [#allocation4], %s972_s17 }
 0x1e9   : > { %p1059_p2 = pnand %p1062_p1, %p1331_p6 }
 0x1eb   : > { %1221 = dma.done.wait (!%p1059_p2), %s973_s19, 64  }
 0x1ec   : > { %1223 = vsyncadd (!%p1059_p2), %s973_s19, 4294967232  ;;  %p19_p3 = scmp.ge.s32.totalorder %s1314_s8, 6   ;;  %s1590_s26 = smov %s1230_s27 }
 0x1ed   : > { %s1591_s27 = smov %s1234_s28  ;;  %s1592_s28 = smov %s1325_s11 }
 0x1ee   : > { %s1593_s29 = smov %s1314_s8  ;;  %21 = sbr.rel (!%p19_p3) target bundleno = 6 (0x6), region = 83 }
 0x1f5   :  { %978 = vsyncpa [#allocation4], 1 }
 0x1f6   :  { %980 = vsyncpa [#allocation4 + $0x1], 1 }

</bundles_post_ra>
